<compile_context>
chip_gen: v6e
topology: v6e:2x2x1
jax: 0.10.0
libtpu: 0.0.40
codegen_flags: <defaults>
</compile_context>

<pallas_src>
import jax
import jax.numpy as jnp
from jax.experimental import pallas as pl
from jax.experimental.pallas import tpu as pltpu

n_embd = 64
dropout = 0.2  # unused at inference


def new_head_kernel(x_ref, w_ref, b_ref, o_ref):
    # x_ref: (tb, D) f32 VMEM   w_ref: (1, D) f32 VMEM
    # b_ref: (1,)   f32 SMEM    o_ref: (tb, 1) f32 VMEM
    # Linear(n_embd -> 1) as elementwise multiply (VPU) + lane reduction (XLU);
    # avoids driving the MXU with a degenerate N=1, K=64 matmul.
    y = jnp.sum(x_ref[...] * w_ref[...], axis=-1, keepdims=True)  # (tb, 1)
    y = y + b_ref[0]
    o_ref[...] = jax.nn.sigmoid(y).astype(o_ref.dtype)


def _round_up(x, m):
    return ((x + m - 1) // m) * m


def _choose_tile(B, tb_max, split_min):
    # Small B: one full-batch block (block dims == array dims, always legal).
    # Medium/large B: split into >=2 8-aligned tiles so "parallel" can shard
    # across v7x's two TensorCores. Huge B: cap at tb_max (multiple of 8).
    if B > tb_max:
        return tb_max
    if B >= split_min:
        return min(tb_max, _round_up(pl.cdiv(B, 2), 8))
    return B


def new_head_forward(x, w, b, *, tb_max=8192, split_min=4096):
    """x: (B, T, D) f32, w: (D, 1) f32, b: (1, 1) f32 -> (B, 1) f32."""
    B, T, D = x.shape

    # Only the last timestep feeds the head (slice-then-linear == linear-then-
    # slice). The slice itself is fused into the pallas input DMA via
    # allow_input_fusion below (under jit), so no (B, D) HBM intermediate.
    x_last = x[:, -1, :]                 # (B, D)
    w_row = w.reshape(1, D)              # broadcastable weight row
    b_vec = b.reshape(1)                 # scalar bias for SMEM

    tb = _choose_tile(B, tb_max, split_min)
    grid = (pl.cdiv(B, tb),)

    return pl.pallas_call(
        new_head_kernel,
        out_shape=jax.ShapeDtypeStruct((B, 1), jnp.float32),
        grid_spec=pltpu.PrefetchScalarGridSpec(
            num_scalar_prefetch=0,
            grid=grid,
            in_specs=[
                pl.BlockSpec((tb, D), lambda i: (i, 0)),            # x_last tile
                pl.BlockSpec((1, D), lambda i: (0, 0)),             # weight row
                pl.BlockSpec(memory_space=pltpu.MemorySpace.SMEM),  # bias scalar
            ],
            out_specs=pl.BlockSpec((tb, 1), lambda i: (i, 0)),
        ),
        compiler_params=pltpu.CompilerParams(
            dimension_semantics=("parallel",),
            # Let XLA fuse the x[:, -1, :] slice into the pallas input DMA.
            allow_input_fusion=[True, False, False],
        ),
    )(x_last, w_row, b_vec)


def init_params(key, d):
    # Deterministic init mimicking nn.Linear default: U(-1/sqrt(d), 1/sqrt(d)).
    kw, kb = jax.random.split(key)
    bound = 1.0 / jnp.sqrt(jnp.float32(d))
    w = jax.random.uniform(kw, (d, 1), jnp.float32, minval=-bound, maxval=bound)
    b = jax.random.uniform(kb, (1, 1), jnp.float32, minval=-bound, maxval=bound)
    return w, b


if __name__ == "__main__":
    key = jax.random.PRNGKey(0)
    kx, kp = jax.random.split(key)

    B, T, D = 2, 8, n_embd
    x = jax.random.normal(kx, (B, T, D), dtype=jnp.float32)
    w, b = init_params(kp, D)

    # jit so the wrapper slice and the pallas call compile into one XLA
    # module, letting allow_input_fusion take effect.
    fwd = jax.jit(new_head_forward)
    out = jax.block_until_ready(fwd(x, w, b))

    # Pure-JAX reference of the PyTorch forward (eval mode).
    ref = jax.nn.sigmoid(x[:, -1, :] @ w + b.reshape(1))
    assert out.shape == (B, 1)
    assert jnp.allclose(out, ref, atol=1e-6, rtol=1e-6)

    print("KERNEL_OK")
</pallas_src>

<mosaic_0001>
module attributes {stable_mosaic.version = 11 : i64} {
  func.func @new_head_kernel(%arg0: i32, %arg1: memref<2x64xf32, #tpu.memory_space<vmem>>, %arg2: memref<1x64xf32, #tpu.memory_space<vmem>>, %arg3: memref<1xf32, #tpu.memory_space<smem>>, %arg4: memref<2x1xf32, #tpu.memory_space<vmem>>) attributes {dimension_semantics = [#tpu.dimension_semantics<parallel>], iteration_bounds = array<i64: 1>, scalar_prefetch = 0 : i64, scratch_operands = 0 : i64, tpu.core_type = #tpu.core_type<tc>, window_params = [{transform_indices = @transform_0, window_bounds = array<i64: 2, 64>}, {pipeline_mode = #tpu.pipeline_mode<synchronous>, transform_indices = @transform_1, window_bounds = array<i64: 1, 64>}, {transform_indices = @transform_2, window_bounds = array<i64: 1>}, {transform_indices = @transform_3, window_bounds = array<i64: 2, 1>}]} {
    %c0 = arith.constant 0 : index
    %c0_0 = arith.constant 0 : index
    %0 = vector.load %arg1[%c0, %c0_0] : memref<2x64xf32, #tpu.memory_space<vmem>>, vector<2x64xf32>
    %c0_1 = arith.constant 0 : index
    %c0_2 = arith.constant 0 : index
    %1 = vector.load %arg2[%c0_1, %c0_2] : memref<1x64xf32, #tpu.memory_space<vmem>>, vector<1x64xf32>
    %2 = vector.broadcast %1 : vector<1x64xf32> to vector<2x64xf32>
    %3 = arith.mulf %0, %2 : vector<2x64xf32>
    %cst = arith.constant dense<0.000000e+00> : vector<2xf32>
    %4 = vector.multi_reduction <add>, %3, %cst [1] : vector<2x64xf32> to vector<2xf32>
    %5 = vector.shape_cast %4 : vector<2xf32> to vector<2x1xf32>
    %c0_3 = arith.constant 0 : index
    %6 = memref.load %arg3[%c0_3] : memref<1xf32, #tpu.memory_space<smem>>
    %7 = vector.broadcast %6 : f32 to vector<2x1xf32>
    %8 = arith.addf %5, %7 : vector<2x1xf32>
    %9 = arith.negf %8 : vector<2x1xf32>
    %10 = math.exp %9 : vector<2x1xf32>
    %cst_4 = arith.constant 1.000000e+00 : f32
    %11 = vector.broadcast %cst_4 : f32 to vector<2x1xf32>
    %12 = arith.addf %11, %10 : vector<2x1xf32>
    %13 = arith.divf %11, %12 : vector<2x1xf32>
    %c0_5 = arith.constant 0 : index
    %c0_6 = arith.constant 0 : index
    %14 = vector.load %arg4[%c0_5, %c0_6] : memref<2x1xf32, #tpu.memory_space<vmem>>, vector<2x1xf32>
    tpu.vector_store %arg4[%c0_5, %c0_6], %13 {strides = array<i32>} : memref<2x1xf32, #tpu.memory_space<vmem>>, vector<2x1xf32>,
    return
  }
  func.func @transform_0(%arg0: i32) -> (i32, i32) {
    %c0_i32 = arith.constant 0 : i32
    %c0_i32_0 = arith.constant 0 : i32
    return %arg0, %c0_i32 : i32, i32
  }
  func.func @transform_1(%arg0: i32) -> (i32, i32) {
    %c0_i32 = arith.constant 0 : i32
    %c0_i32_0 = arith.constant 0 : i32
    %c0_i32_1 = arith.constant 0 : i32
    return %c0_i32, %c0_i32_0 : i32, i32
  }
  func.func @transform_2(%arg0: i32) -> i32 {
    %c0_i32 = arith.constant 0 : i32
    %c0_i32_0 = arith.constant 0 : i32
    return %c0_i32 : i32
  }
  func.func @transform_3(%arg0: i32) -> (i32, i32) {
    %c0_i32 = arith.constant 0 : i32
    %c0_i32_0 = arith.constant 0 : i32
    return %arg0, %c0_i32 : i32, i32
  }
}

</mosaic_0001>

<bundles_post_ra>
// kernel: new_head_forward.1
= control target key start
LH: loop header
LB: loop body
LE: loop exit
PB: predicated region body
PF: predicated region fallthrough
CT: control target
= control target key end

     0   :  { %vm24_vm0 = vcmask 517120   ;;  %vm37_vm1 = vcmask 1024   ;;  %s81_s0 = inlined_call_operand.vmem [shape: f32[2,64], index: 0, kind: input, shape index: {}]   ;;  %s82_s1 = inlined_call_operand.vmem [shape: f32[1,64], index: 1, kind: input, shape index: {}]   ;;  %s83_s2 = inlined_call_operand.<no memory space> [shape: f32[1], index: 2, kind: input, shape index: {}]   ;;  %s84_s3 = inlined_call_operand.vmem [shape: f32[2,1], index: 3, kind: output, shape index: {}]  }
   0x1   :  { %v15_v0 = vld [vmem:[%s81_s0] sm:$0x3]  ;;  %v29_v4 = vstv %s83_s2 }
   0x2   :  { %v43_v1 = vld [vmem:[%s82_s1] ss:$0 sm:$0xff] }
   0x3   :  { %v23_v2 = vmul.f32 %v43_v1, %v15_v0 }
   0x5   :  { %v25_v3 = vsel %vm24_vm0, %v23_v2, 0.0 }
   0x6   :  { %26 = vadd.xlane.f32.xlu0 %v25_v3 }
  0x8f   :  { %v27_v5 = vpop.xlane.xlu0 %26 }
  0x90   :  { %v30_v6 = vadd.f32 %v29_v4, %v27_v5 }
  0x92   :  { %v44_v7 = vmul.f32 -1.442695, %v30_v6 }
  0x94   :  { %45 = vpow2.f32 %v44_v7 }
  0xa1   :  { %v46_v8 = vpop.eup %45 }
  0xa2   :  { %v34_v9 = vadd.f32 1.0, %v46_v8 }
  0xa4   :  { %47 = vrcp.f32 %v34_v9 }
  0xb1   :  { %v48_v10 = vpop.eup %47 }
  0xb2   :  { %38 = vst.msk [vmem:[%s84_s3] sm:$0x3] %vm37_vm1, %v48_v10 }

</bundles_post_ra>
